<compile_context>
chip_gen: v7x
topology: tpu7x:2x2x1
jax: 0.10.0
libtpu: 0.0.40
codegen_flags: <defaults>
</compile_context>

<pallas_src>
import functools

import jax
import jax.numpy as jnp
from jax.experimental import pallas as pl
from jax.experimental.pallas import tpu as pltpu


def cam_kernel(x_ref, w1t_ref, b1_ref, w2t_ref, b2_ref, o_ref, *, inv_hw):
    # x_ref: (TB, C, HW) block (native dtype). Per-image pooling over HW.
    x = x_ref[...]                                            # (TB, C, HW)
    tb = x.shape[0]

    # adaptive_max_pool2d / adaptive_avg_pool2d (output_size=1) == reduce over
    # the flattened spatial (lane) axis. Max in the native dtype is exact;
    # the mean accumulates in f32.
    mx = jnp.max(x, axis=-1).astype(jnp.float32)              # (TB, C)
    av = jnp.sum(x, axis=-1, dtype=jnp.float32) * inv_hw      # (TB, C)

    # Fused shared MLP: run all 2*TB pooled vectors in one pass.
    # Rows [0, TB) are the max-pool path, rows [TB, 2*TB) the avg-pool path.
    pooled = jnp.concatenate([mx, av], axis=0)                # (2*TB, C)
    w1t = w1t_ref[...]                                        # (C, Cr)
    b1 = b1_ref[...]                                          # (1, Cr)
    w2t = w2t_ref[...]                                        # (Cr, C)
    b2 = b2_ref[...]                                          # (1, C)

    h = jnp.dot(pooled, w1t, preferred_element_type=jnp.float32) + b1   # (2*TB, Cr)
    h = jnp.maximum(h, 0.0)                                              # ReLU
    z = jnp.dot(h, w2t, preferred_element_type=jnp.float32) + b2        # (2*TB, C)

    # sigmoid(linear(max) + linear(avg)) per image.
    gate = jax.nn.sigmoid(z[:tb] + z[tb:])                    # (TB, C) f32

    # Apply the channel gate in the I/O dtype (no whole-block f32 temp).
    o_ref[...] = x * gate.astype(x.dtype)[:, :, None]


def cam_forward(x_nchw, w1, b1, w2, b2):
    """CAM forward.

    x_nchw : (B, C, H, W)
    w1     : (C//r, C)   first Linear weight  (PyTorch layout)
    b1     : (C//r,)     first Linear bias
    w2     : (C, C//r)   second Linear weight (PyTorch layout)
    b2     : (C,)        second Linear bias
    """
    B, C, H, W = x_nchw.shape
    HW = H * W
    Cr = w1.shape[0]
    x_flat = x_nchw.reshape(B, C, HW)   # metadata-only reshape, no HBM pass

    # Pre-transpose weights (f32) so the in-kernel MLP is plain row-vector
    # matmuls; biases as row vectors for direct broadcast.
    w1t = jnp.asarray(w1, jnp.float32).T          # (C, Cr)
    w2t = jnp.asarray(w2, jnp.float32).T          # (Cr, C)
    b1r = jnp.asarray(b1, jnp.float32).reshape(1, Cr)
    b2r = jnp.asarray(b2, jnp.float32).reshape(1, C)

    itemsize = jnp.dtype(x_nchw.dtype).itemsize
    param_bytes = (w1t.size + b1r.size + w2t.size + b2r.size) * 4

    # Device VMEM capacity (v5e/v6e 128 MiB, v7x 64 MiB per TC); keep headroom.
    try:
        vmem_cap = int(pltpu.get_tpu_info().vmem_capacity_bytes)
    except Exception:
        vmem_cap = 64 << 20   # conservative (v7x-class) fallback
    cap = int(0.85 * vmem_cap)

    # Batch-tile: per image the pipelined footprint is in+out, double-buffered.
    per_img = 4 * C * HW * itemsize
    budget = max(per_img, cap - param_bytes - (2 << 20))
    tb_max = max(1, min(B, budget // per_img))
    TB = 1
    for t in range(tb_max, 0, -1):      # largest divisor of B that fits
        if B % t == 0:
            TB = t
            break
    # TODO(synk): if even TB=1 exceeds the VMEM budget (huge C*HW single
    # image), split the HW axis across grid steps as well.

    vmem_need = 4 * TB * C * HW * itemsize + param_bytes + (2 << 20)
    vmem_limit = int(max(16 << 20, min(vmem_need, cap)))

    cost = pl.CostEstimate(
        flops=3 * B * C * HW + 8 * B * C * Cr,
        transcendentals=B * C,
        bytes_accessed=2 * B * C * HW * itemsize + param_bytes,
    )

    kernel = functools.partial(cam_kernel, inv_hw=1.0 / HW)

    out_flat = pl.pallas_call(
        kernel,
        out_shape=jax.ShapeDtypeStruct((B, C, HW), x_nchw.dtype),
        grid_spec=pltpu.PrefetchScalarGridSpec(
            num_scalar_prefetch=0,
            grid=(B // TB,),
            in_specs=[
                # TB images per grid step -> pipelined DMA in/out.
                pl.BlockSpec((TB, C, HW), lambda b: (b, 0, 0)),
                # Weights: constant block index -> resident in VMEM.
                pl.BlockSpec(w1t.shape, lambda b: (0, 0)),
                pl.BlockSpec(b1r.shape, lambda b: (0, 0)),
                pl.BlockSpec(w2t.shape, lambda b: (0, 0)),
                pl.BlockSpec(b2r.shape, lambda b: (0, 0)),
            ],
            out_specs=pl.BlockSpec((TB, C, HW), lambda b: (b, 0, 0)),
        ),
        compiler_params=pltpu.CompilerParams(
            dimension_semantics=("parallel",),
            vmem_limit_bytes=vmem_limit,
        ),
        cost_estimate=cost,
    )(x_flat, w1t, b1r, w2t, b2r)

    return out_flat.reshape(B, C, H, W)


def cam_reference(x, w1, b1, w2, b2):
    # Pure-JAX reference mirroring the PyTorch forward (nn.Linear layout).
    mx = jnp.max(x, axis=(2, 3))
    av = jnp.mean(x, axis=(2, 3))

    def mlp(v):
        h = jnp.maximum(v @ w1.T + b1, 0.0)
        return h @ w2.T + b2

    gate = jax.nn.sigmoid(mlp(mx) + mlp(av))
    return gate[:, :, None, None] * x


if __name__ == "__main__":
    B, C, H, W = 2, 4, 16, 16
    r = 2
    Cr = C // r

    key = jax.random.PRNGKey(0)
    kx, kw1, kb1, kw2, kb2 = jax.random.split(key, 5)

    x = jax.random.normal(kx, (B, C, H, W), dtype=jnp.float32)

    # Parameters in PyTorch nn.Linear layout: weight (out, in), bias (out,).
    w1 = jax.random.normal(kw1, (Cr, C), dtype=jnp.float32) * 0.1
    b1 = jax.random.normal(kb1, (Cr,), dtype=jnp.float32) * 0.1
    w2 = jax.random.normal(kw2, (C, Cr), dtype=jnp.float32) * 0.1
    b2 = jax.random.normal(kb2, (C,), dtype=jnp.float32) * 0.1

    out = cam_forward(x, w1, b1, w2, b2)
    out = jax.block_until_ready(out)

    ref = cam_reference(x, w1, b1, w2, b2)
    assert out.shape == (B, C, H, W)
    assert jnp.allclose(out, ref, atol=1e-5, rtol=1e-5)

    print("KERNEL_OK")
</pallas_src>

<mosaic_0001>
module attributes {stable_mosaic.version = 11 : i64} {
  func.func @cam_kernel(%arg0: i32, %arg1: memref<2x4x256xf32, #tpu.memory_space<vmem>>, %arg2: memref<4x2xf32, #tpu.memory_space<vmem>>, %arg3: memref<1x2xf32, #tpu.memory_space<vmem>>, %arg4: memref<2x4xf32, #tpu.memory_space<vmem>>, %arg5: memref<1x4xf32, #tpu.memory_space<vmem>>, %arg6: memref<2x4x256xf32, #tpu.memory_space<vmem>>) attributes {dimension_semantics = [#tpu.dimension_semantics<parallel>], iteration_bounds = array<i64: 1>, scalar_prefetch = 0 : i64, scratch_operands = 0 : i64, tpu.core_type = #tpu.core_type<tc>, window_params = [{transform_indices = @transform_0, window_bounds = array<i64: 2, 4, 256>}, {pipeline_mode = #tpu.pipeline_mode<synchronous>, transform_indices = @transform_1, window_bounds = array<i64: 4, 2>}, {pipeline_mode = #tpu.pipeline_mode<synchronous>, transform_indices = @transform_2, window_bounds = array<i64: 1, 2>}, {pipeline_mode = #tpu.pipeline_mode<synchronous>, transform_indices = @transform_3, window_bounds = array<i64: 2, 4>}, {pipeline_mode = #tpu.pipeline_mode<synchronous>, transform_indices = @transform_4, window_bounds = array<i64: 1, 4>}, {transform_indices = @transform_5, window_bounds = array<i64: 2, 4, 256>}]} {
    %c0 = arith.constant 0 : index
    %c0_0 = arith.constant 0 : index
    %c0_1 = arith.constant 0 : index
    %0 = vector.load %arg1[%c0, %c0_0, %c0_1] : memref<2x4x256xf32, #tpu.memory_space<vmem>>, vector<2x4x256xf32>
    %cst = arith.constant dense<0xFF800000> : vector<2x4xf32>
    %1 = vector.multi_reduction <maximumf>, %0, %cst [2] : vector<2x4x256xf32> to vector<2x4xf32>
    %cst_2 = arith.constant dense<0.000000e+00> : vector<2x4xf32>
    %2 = vector.multi_reduction <add>, %0, %cst_2 [2] : vector<2x4x256xf32> to vector<2x4xf32>
    %cst_3 = arith.constant 3.906250e-03 : f32
    %3 = vector.broadcast %cst_3 : f32 to vector<2x4xf32>
    %4 = arith.mulf %2, %3 : vector<2x4xf32>
    %5 = tpu.concatenate %1, %4 in 0 : vector<2x4xf32>, vector<2x4xf32> -> vector<4x4xf32>
    %c0_4 = arith.constant 0 : index
    %c0_5 = arith.constant 0 : index
    %6 = vector.load %arg2[%c0_4, %c0_5] : memref<4x2xf32, #tpu.memory_space<vmem>>, vector<4x2xf32>
    %c0_6 = arith.constant 0 : index
    %c0_7 = arith.constant 0 : index
    %7 = vector.load %arg3[%c0_6, %c0_7] : memref<1x2xf32, #tpu.memory_space<vmem>>, vector<1x2xf32>
    %c0_8 = arith.constant 0 : index
    %c0_9 = arith.constant 0 : index
    %8 = vector.load %arg4[%c0_8, %c0_9] : memref<2x4xf32, #tpu.memory_space<vmem>>, vector<2x4xf32>
    %c0_10 = arith.constant 0 : index
    %c0_11 = arith.constant 0 : index
    %9 = vector.load %arg5[%c0_10, %c0_11] : memref<1x4xf32, #tpu.memory_space<vmem>>, vector<1x4xf32>
    %cst_12 = arith.constant dense<0.000000e+00> : vector<4x2xf32>
    %10 = tpu.matmul %5, %6, %cst_12 {dimension_numbers = #tpu.dot_dimension_numbers<[1], [0], [0], [1], [0, 0, 1, 1], [], []>} : vector<4x4xf32>, vector<4x2xf32>, vector<4x2xf32> -> vector<4x2xf32>
    %11 = vector.broadcast %7 : vector<1x2xf32> to vector<4x2xf32>
    %12 = arith.addf %10, %11 : vector<4x2xf32>
    %cst_13 = arith.constant 0.000000e+00 : f32
    %13 = vector.broadcast %cst_13 : f32 to vector<4x2xf32>
    %14 = arith.maximumf %12, %13 : vector<4x2xf32>
    %cst_14 = arith.constant dense<0.000000e+00> : vector<4x4xf32>
    %15 = tpu.matmul %14, %8, %cst_14 {dimension_numbers = #tpu.dot_dimension_numbers<[1], [0], [0], [1], [0, 0, 1, 1], [], []>} : vector<4x2xf32>, vector<2x4xf32>, vector<4x4xf32> -> vector<4x4xf32>
    %16 = vector.broadcast %9 : vector<1x4xf32> to vector<4x4xf32>
    %17 = arith.addf %15, %16 : vector<4x4xf32>
    %18 = vector.extract_strided_slice %17 {offsets = [0, 0], sizes = [2, 4], strides = [1, 1]} : vector<4x4xf32> to vector<2x4xf32>
    %19 = vector.extract_strided_slice %17 {offsets = [2, 0], sizes = [2, 4], strides = [1, 1]} : vector<4x4xf32> to vector<2x4xf32>
    %20 = arith.addf %18, %19 : vector<2x4xf32>
    %21 = arith.negf %20 : vector<2x4xf32>
    %22 = math.exp %21 : vector<2x4xf32>
    %cst_15 = arith.constant 1.000000e+00 : f32
    %23 = vector.broadcast %cst_15 : f32 to vector<2x4xf32>
    %24 = arith.addf %23, %22 : vector<2x4xf32>
    %25 = arith.divf %23, %24 : vector<2x4xf32>
    %26 = vector.shape_cast %25 : vector<2x4xf32> to vector<2x4x1xf32>
    %27 = vector.broadcast %26 : vector<2x4x1xf32> to vector<2x4x256xf32>
    %28 = arith.mulf %0, %27 : vector<2x4x256xf32>
    %c0_16 = arith.constant 0 : index
    %c0_17 = arith.constant 0 : index
    %c0_18 = arith.constant 0 : index
    %29 = vector.load %arg6[%c0_16, %c0_17, %c0_18] : memref<2x4x256xf32, #tpu.memory_space<vmem>>, vector<2x4x256xf32>
    tpu.vector_store %arg6[%c0_16, %c0_17, %c0_18], %28 {strides = array<i32>} : memref<2x4x256xf32, #tpu.memory_space<vmem>>, vector<2x4x256xf32>,
    return
  }
  func.func @transform_0(%arg0: i32) -> (i32, i32, i32) {
    %c0_i32 = arith.constant 0 : i32
    %c0_i32_0 = arith.constant 0 : i32
    %c0_i32_1 = arith.constant 0 : i32
    return %arg0, %c0_i32, %c0_i32_0 : i32, i32, i32
  }
  func.func @transform_1(%arg0: i32) -> (i32, i32) {
    %c0_i32 = arith.constant 0 : i32
    %c0_i32_0 = arith.constant 0 : i32
    %c0_i32_1 = arith.constant 0 : i32
    return %c0_i32, %c0_i32_0 : i32, i32
  }
  func.func @transform_2(%arg0: i32) -> (i32, i32) {
    %c0_i32 = arith.constant 0 : i32
    %c0_i32_0 = arith.constant 0 : i32
    %c0_i32_1 = arith.constant 0 : i32
    return %c0_i32, %c0_i32_0 : i32, i32
  }
  func.func @transform_3(%arg0: i32) -> (i32, i32) {
    %c0_i32 = arith.constant 0 : i32
    %c0_i32_0 = arith.constant 0 : i32
    %c0_i32_1 = arith.constant 0 : i32
    return %c0_i32, %c0_i32_0 : i32, i32
  }
  func.func @transform_4(%arg0: i32) -> (i32, i32) {
    %c0_i32 = arith.constant 0 : i32
    %c0_i32_0 = arith.constant 0 : i32
    %c0_i32_1 = arith.constant 0 : i32
    return %c0_i32, %c0_i32_0 : i32, i32
  }
  func.func @transform_5(%arg0: i32) -> (i32, i32, i32) {
    %c0_i32 = arith.constant 0 : i32
    %c0_i32_0 = arith.constant 0 : i32
    %c0_i32_1 = arith.constant 0 : i32
    return %arg0, %c0_i32, %c0_i32_0 : i32, i32, i32
  }
}

</mosaic_0001>

<bundles_post_ra>
// kernel: tpu_custom_call.1
= control target key start
LH: loop header
LB: loop body
LE: loop exit
PB: predicated region body
PF: predicated region fallthrough
CT: control target
= control target key end

     0   :  { %10 = vsyncpa [#allocation3], 0  ;;  %s514_s0 = inlined_call_operand.hbm [shape: f32[2,4,256], index: 0, kind: input, shape index: {}]   ;;  %s515_s1 = inlined_call_operand.vmem [shape: f32[4,2], index: 1, kind: input, shape index: {}]   ;;  %s516_s2 = inlined_call_operand.vmem [shape: f32[1,2], index: 2, kind: input, shape index: {}]   ;;  %s517_s3 = inlined_call_operand.vmem [shape: f32[2,4], index: 3, kind: input, shape index: {}]   ;;  %s518_s4 = inlined_call_operand.vmem [shape: f32[1,4], index: 4, kind: input, shape index: {}]   ;;  %s519_s5 = inlined_call_operand.hbm [shape: f32[2,4,256], index: 5, kind: output, shape index: {}]  }
   0x1   :  { %11 = vsyncpa [#allocation4], 0  ;;  %s412_s18 = smov [#allocation2]   ;;  %s364_s22 = scalar_lea.hbm %s514_s0, 256 }
   0x2   :  { %s17_s19 = sshll.u32 %s412_s18, 4  ;;  %p365_p0 = scmp.ne.s32.totalorder %s514_s0, %s364_s22  ;;  %s18_s19 = int_to_ptr.vmem [resolvable:$true] %s17_s19 }
   0x3   :  { %p368_p1 = scmp.lt.u32.totalorder %s364_s22, %s514_s0 }
   0x5   :  { %p370_p2 = pnand %p368_p1, %p365_p0 }
   0x7   :  { %373 = shalt.err (!%p370_p2)
}
   0x8   :  { %s374_s27 = scalar_lea.vmem %s18_s19, 256  ;;  %p379_p4 = scmp.lt.s32.totalorder %s18_s19, %s18_s19 }
   0x9   :  { %p375_p3 = scmp.ne.s32.totalorder %s18_s19, %s374_s27  ;;  %p380_p5 = scmp.lt.s32.totalorder %s374_s27, %s374_s27 }
   0xb   :  { %p381_p6 = por %p380_p5, %p379_p4 }
   0xd   :  { %p382_p7 = pnand %p381_p6, %p375_p3 }
   0xf   :  { %385 = shalt.err (!%p382_p7)
}
  0x10   :  { %s413_s28 = smov 128   ;;  %s414_s29 = smov 8  }
  0x11   :  { %23 = dma.hbm_to_vmem [thread:$0]  %s514_s0, 256, %s18_s19, [#allocation3], %s413_s28, %s413_s28, %s414_s29  }
  0x12   :  { %408 = dma.done.wait [#allocation3], 256  }
  0x13   :  { %409 = vsyncadd [#allocation3], 4294967040  ;;  %vm43_vm0 = vcmask 1043456   ;;  %v464_v0 = vld [vmem:[#allocation2] sm:$0xff]  ;;  %v466_v1 = vld [vmem:[#allocation2 + $0x8] sm:$0xff]  ;;  %v415_v17 = vmov 0.0   ;;  %v68_v18 = vlaneseq }
  0x14   :  { %v39_v2 = vcombine.high %v464_v0, %v464_v0  ;;  %v54_v3 = vsel %vm43_vm0, %v464_v0, 0.0  ;;  %v44_v4 = vsel %vm43_vm0, %v464_v0, -inf  ;;  %v40_v5 = vcombine.high %v466_v1, %v466_v1  ;;  %v96_v16 = vld [vmem:[%s515_s1] sm:$0xf]  ;;  %341 = vmatprep.subr.mxu0 %v415_v17  ;;  %346 = vmatprep.subr.mxu1 %v415_v17 }
  0x15   :  { %v59_v6 = vsel %vm43_vm0, %v466_v1, 0.0  ;;  %v49_v7 = vsel %vm43_vm0, %v466_v1, -inf  ;;  %vm416_vm1 = vmmov 0   ;;  %342 = vmatpush3.msk.msra.mxu0 %vm43_vm0, %v96_v16  ;;  %v69_v19 = vand.u32 127, %v68_v18  ;;  %v98_v35 = vld [vmem:[%s517_s3] sm:$0x3] }
  0x16   :  { %v55_v8 = vsel %vm43_vm0, %v39_v2, 0.0  ;;  %v45_v9 = vsel %vm43_vm0, %v39_v2, -inf  ;;  %v60_v10 = vsel %vm43_vm0, %v40_v5, 0.0  ;;  %v50_v11 = vsel %vm43_vm0, %v40_v5, -inf  ;;  %343 = vmatprep.mubr.msk.f32.mxu0 %vm416_vm1, %v415_v17  ;;  %348 = vmatprep.mubr.msk.f32.mxu1 %vm416_vm1, %v415_v17  ;;  %v330_v36 = vld [vmem:[%s516_s2] ss:$0 sm:$0xff] }
  0x17   :  { %v56_v12 = vadd.f32 %v55_v8, %v54_v3  ;;  %v46_v13 = vmax.f32 %v44_v4, %v45_v9  ;;  %v61_v14 = vadd.f32 %v60_v10, %v59_v6  ;;  %v51_v15 = vmax.f32 %v49_v7, %v50_v11  ;;  %v333_v41 = vld [vmem:[%s518_s4] ss:$0 sm:$0xff]  ;;  %s418_s2 = smov [#allocation5]  }
  0x18   :  { %v71_v20 = vshrl.u32 %v68_v18, 7  ;;  %vm78_vm2 = vcmask 1041409   ;;  %vm91_vm3 = vcmask 1043459   ;;  %vm94_vm4 = vcmask 1041408   ;;  %s318_s3 = sshll.u32 %s418_s2, 4  ;;  %s319_s3 = int_to_ptr.vmem [resolvable:$true] %s318_s3 }
  0x19   :  { %57 = vadd.xlane.f32.xlu0 %v56_v12  ;;  %47 = vmax.xlane.f32.xlu1 %v46_v13  ;;  %vm106_vm5 = vcmask 31744   ;;  %vm190_vm6 = vcmask 15360   ;;  %v417_v55 = vmov 839922192   ;;  %s386_s4 = scalar_lea.vmem %s319_s3, 256  ;;  %p391_p9 = scmp.lt.s32.totalorder %s319_s3, %s319_s3 }
  0x1a   :  { %v72_v23 = vsub.s32 %v69_v19, %v71_v20  ;;  %347 = vmatpush3.msk.msra.mxu1 %vm94_vm4, %v98_v35  ;;  %v286_v50 = vsub.s32 1, %v71_v20  ;;  %v279_v51 = vsub.s32 0, %v71_v20  ;;  %v294_v56 = vunpack.c.l.s4 %v417_v55  ;;  %p387_p8 = scmp.ne.s32.totalorder %s319_s3, %s386_s4  ;;  %p392_p10 = scmp.lt.s32.totalorder %s386_s4, %s386_s4 }
  0x1c   :  { %v295_v57 = vunpack.c.0.s8 %v294_v56  ;;  %p393_p11 = por %p392_p10, %p391_p9 }
  0x1d   :  { %62 = vadd.xlane.f32.xlu0 %v61_v14  ;;  %52 = vmax.xlane.f32.xlu1 %v51_v15 }
  0x1e   :  { %v298_v58 = vsub.s32 %v295_v57, %v71_v20  ;;  %p394_p12 = pnand %p393_p11, %p387_p8 }
  0xa6   :  { %v58_v21 = vpop.xlane.xlu0 %57  ;;  %v48_v22 = vpop.xlane.xlu1 %47 }
  0xa7   :  { %v64_v24 = vmul.f32 0.00390625, %v58_v21  ;;  %v73_v30 = vrot.slane %v48_v22, %v72_v23 }
  0xa9   :  { %v86_v29 = vrot.slane %v64_v24, %v72_v23 }
  0xaa   :  { %v63_v25 = vpop.xlane.xlu0 %62  ;;  %v53_v26 = vpop.xlane.xlu1 %52 }
  0xab   :  { %v65_v27 = vmul.f32 0.00390625, %v63_v25  ;;  %v77_v28 = vrot.slane %v53_v26, %v72_v23 }
  0xad   :  { %v90_v31 = vrot.slane %v65_v27, %v72_v23  ;;  %v79_v32 = vsel %vm78_vm2, %v77_v28, %v73_v30 }
  0xaf   :  { %v92_v33 = vsel %vm91_vm3, %v90_v31, %v86_v29 }
  0xb0   :  { %v95_v34 = vsel %vm94_vm4, %v79_v32, %v92_v33 }
  0xb1   :  { %344 = vmatmul.mubr.msk.f32.vlgmr.msra.gmra.mrb[0].mxu0 %vm106_vm5, %v95_v34 }
 0x184   :  { %v179_v37 = vpop.f32.mrb[0].mxu0 }
 0x185   :  { %v180_v38 = vadd.f32 %v330_v36, %v179_v37  ;;  %v345_v39 = vpop.f32.mrb[1].mxu0 }
 0x187   :  { %v183_v40 = vmax.f32 %v180_v38, 0.0 }
 0x189   :  { %349 = vmatmul.mubr.msk.f32.vlgmr.msra.gmra.mrb[0].mxu1 %vm190_vm6, %v183_v40 }
 0x25c   :  { %v263_v42 = vpop.f32.mrb[0].mxu1 }
 0x25d   :  { %v264_v43 = vadd.f32 %v333_v41, %v263_v42  ;;  %v350_v44 = vpop.f32.mrb[1].mxu1 }
 0x25f   :  { %v268_v45 = vrot.slane %v264_v43, 2 }
 0x261   :  { %v270_v46 = vadd.f32 %v268_v45, %v264_v43 }
 0x263   :  { %v336_v47 = vmul.f32 -1.442695, %v270_v46 }
 0x265   :  { %360 = vpow2.f32 %v336_v47 }
 0x26f   :  { %v361_v48 = vpop.eup %360 }
 0x270   :  { %v274_v49 = vadd.f32 1.0, %v361_v48 }
 0x272   :  { %362 = vrcp.f32 %v274_v49 }
 0x27c   :  { %v363_v52 = vpop.eup %362 }
 0x27d   :  { %v287_v53 = vrot.slane %v363_v52, %v286_v50  ;;  %v280_v54 = vrot.slane %v363_v52, %v279_v51 }
 0x27f   :  { %289 = vbcast.lane.b32.xlu1 %v287_v53, 256  ;;  %282 = vbcast.lane.b32.xlu0 %v280_v54, 256 }
 0x2f1   :  { %v290_v59 = vpop.permute.xlu1 %289  ;;  %v283_v60 = vpop.permute.xlu0 %282 }
 0x2f2   :  { %v306_v61 = vrot.slane %v290_v59, %v298_v58  ;;  %v299_v62 = vrot.slane %v283_v60, %v298_v58 }
 0x2f4   :  { %v310_v63 = vmul.f32 %v306_v61, %v466_v1  ;;  %v309_v2 = vmul.f32 %v299_v62, %v464_v0 }
 0x2f6   :  { %312 = vst [vmem:[#allocation5 + $0x8] sm:$0xff] %v310_v63  ;;  %311 = vst [vmem:[#allocation5] sm:$0xff] %v309_v2 }
 0x2f7   :  { %397 = shalt.err (!%p394_p12)
}
 0x2f8   :  { %s398_s15 = scalar_lea.hbm %s519_s5, 256 }
 0x2f9   :  { %p399_p13 = scmp.ne.s32.totalorder %s519_s5, %s398_s15  ;;  %p402_p0 = scmp.lt.u32.totalorder %s398_s15, %s519_s5 }
 0x2fb   :  { %p404_p1 = pnand %p402_p0, %p399_p13 }
 0x2fd   :  { %407 = shalt.err (!%p404_p1)
}
 0x2fe   :  { %324 = dma.vmem_to_hbm [thread:$0]  %s319_s3, 256, %s519_s5, [#allocation4], %s413_s28, %s413_s28, %s414_s29  }
 0x2ff   :  { %410 = dma.done.wait [#allocation4], 256  }
 0x300   :  { %411 = vsyncadd [#allocation4], 4294967040 }
 0x301   :  { %328 = vsyncpa [#allocation3], 1 }
 0x302   :  { %329 = vsyncpa [#allocation4], 1 }

</bundles_post_ra>
